<compile_context>
chip_gen: v5e
topology: v5e:2x2
jax: 0.10.0
libtpu: 0.0.40
codegen_flags: <defaults>
</compile_context>

<pallas_src>
import jax
import jax.numpy as jnp
from jax.experimental import pallas as pl
from jax.experimental.pallas import tpu as pltpu

d_model = 512
d_ff = 2048


def _round_up(a, b):
    return (a + b - 1) // b * b


def ffn_kernel(x_ref, w1_ref, b1_ref, w2_ref, b2_ref, o_ref):
    k = pl.program_id(1)

    @pl.when(k == 0)
    def _():
        # Initialize the (resident, f32) output tile with the second bias.
        o_ref[...] = jnp.broadcast_to(b2_ref[...].astype(jnp.float32), o_ref.shape)

    # h = relu(x_tile @ W1_tile + b1_tile)   -> (tm, tf) f32
    h = jnp.dot(x_ref[...], w1_ref[...], preferred_element_type=jnp.float32)
    h = h + b1_ref[pl.ds(k, 1), :].astype(jnp.float32)
    h = jnp.maximum(h, 0.0)

    # out_tile += h @ W2_tile                -> (tm, d_model) f32
    o_ref[...] += jnp.dot(
        h.astype(w2_ref.dtype), w2_ref[...], preferred_element_type=jnp.float32
    )


def feed_forward(x, w1, b1, w2, b2, *, tf=256, tm_max=256):
    """Fused FFN: relu(x @ W1 + b1) @ W2 + b2.

    x: (batch, seq, d_model); w1: (d_model, d_ff); b1: (d_ff,);
    w2: (d_ff, d_model); b2: (d_model,).
    Matmuls run in bf16 on the MXU with f32 accumulation; output is f32.
    """
    batch, seq, dm = x.shape
    dff = w1.shape[1]
    assert dff % tf == 0
    n_k = dff // tf

    M = batch * seq
    tm = tm_max if M >= tm_max else _round_up(M, 8)
    M_pad = _round_up(M, tm)

    x2d = x.reshape(M, dm).astype(jnp.bfloat16)
    if M_pad != M:
        x2d = jnp.pad(x2d, ((0, M_pad - M), (0, 0)))

    w1_bf = w1.astype(jnp.bfloat16)
    w2_bf = w2.astype(jnp.bfloat16)
    b1_2d = b1.reshape(n_k, tf).astype(jnp.float32)   # resident, row k per step
    b2_2d = b2.reshape(1, dm).astype(jnp.float32)

    out2d = pl.pallas_call(
        ffn_kernel,
        out_shape=jax.ShapeDtypeStruct((M_pad, dm), jnp.float32),
        grid_spec=pltpu.PrefetchScalarGridSpec(
            num_scalar_prefetch=0,
            grid=(M_pad // tm, n_k),                # (M tiles, d_ff reduction)
            in_specs=[
                pl.BlockSpec((tm, dm), lambda i, k: (i, 0)),    # x tile
                pl.BlockSpec((dm, tf), lambda i, k: (0, k)),    # W1 tile (streamed)
                pl.BlockSpec((n_k, tf), lambda i, k: (0, 0)),   # b1 (resident)
                pl.BlockSpec((tf, dm), lambda i, k: (k, 0)),    # W2 tile (streamed)
                pl.BlockSpec((1, dm), lambda i, k: (0, 0)),     # b2 (resident)
            ],
            out_specs=pl.BlockSpec((tm, dm), lambda i, k: (i, 0)),  # f32 acc
        ),
        compiler_params=pltpu.CompilerParams(
            dimension_semantics=("parallel", "arbitrary"),
            vmem_limit_bytes=64 * 1024 * 1024,
        ),
    )(x2d, w1_bf, b1_2d, w2_bf, b2_2d)

    return out2d[:M].reshape(batch, seq, dm)


if __name__ == "__main__":
    key = jax.random.PRNGKey(0)
    k_x, k_w1, k_b1, k_w2, k_b2 = jax.random.split(key, 5)

    batch, seq = 2, 8
    x = jax.random.normal(k_x, (batch, seq, d_model), dtype=jnp.float32)

    # Deterministic parameter init (matches nn.Linear's uniform(-1/sqrt(fan_in), ...)).
    bound1 = 1.0 / (d_model ** 0.5)
    w1 = jax.random.uniform(k_w1, (d_model, d_ff), jnp.float32, -bound1, bound1)
    b1 = jax.random.uniform(k_b1, (d_ff,), jnp.float32, -bound1, bound1)
    bound2 = 1.0 / (d_ff ** 0.5)
    w2 = jax.random.uniform(k_w2, (d_ff, d_model), jnp.float32, -bound2, bound2)
    b2 = jax.random.uniform(k_b2, (d_model,), jnp.float32, -bound2, bound2)

    out = feed_forward(x, w1, b1, w2, b2)
    out = jax.block_until_ready(out)
    assert out.shape == (batch, seq, d_model)

    # Reference mirroring the kernel's bf16-input / f32-accumulate arithmetic.
    xb = x.astype(jnp.bfloat16).astype(jnp.float32)
    w1b = w1.astype(jnp.bfloat16).astype(jnp.float32)
    w2b = w2.astype(jnp.bfloat16).astype(jnp.float32)
    h_ref = jnp.maximum(xb @ w1b + b1, 0.0)
    h_ref = h_ref.astype(jnp.bfloat16).astype(jnp.float32)
    ref = h_ref @ w2b + b2
    assert jnp.allclose(out, ref, atol=5e-2, rtol=5e-2), "mismatch vs reference"

    print("KERNEL_OK")
</pallas_src>

<mosaic_0001>
module attributes {stable_mosaic.version = 11 : i64} {
  func.func @ffn_kernel(%arg0: i32, %arg1: i32, %arg2: memref<16x512xbf16, #tpu.memory_space<vmem>>, %arg3: memref<512x256xbf16, #tpu.memory_space<vmem>>, %arg4: memref<8x256xf32, #tpu.memory_space<vmem>>, %arg5: memref<256x512xbf16, #tpu.memory_space<vmem>>, %arg6: memref<1x512xf32, #tpu.memory_space<vmem>>, %arg7: memref<16x512xf32, #tpu.memory_space<vmem>>) attributes {dimension_semantics = [#tpu.dimension_semantics<parallel>, #tpu.dimension_semantics<arbitrary>], iteration_bounds = array<i64: 1, 8>, scalar_prefetch = 0 : i64, scratch_operands = 0 : i64, tpu.core_type = #tpu.core_type<tc>, window_params = [{transform_indices = @transform_0, window_bounds = array<i64: 16, 512>}, {transform_indices = @transform_1, window_bounds = array<i64: 512, 256>}, {pipeline_mode = #tpu.pipeline_mode<synchronous>, transform_indices = @transform_2, window_bounds = array<i64: 8, 256>}, {transform_indices = @transform_3, window_bounds = array<i64: 256, 512>}, {pipeline_mode = #tpu.pipeline_mode<synchronous>, transform_indices = @transform_4, window_bounds = array<i64: 1, 512>}, {transform_indices = @transform_5, window_bounds = array<i64: 16, 512>}]} {
    %c0_i32 = arith.constant 0 : i32
    %0 = arith.cmpi eq, %arg1, %c0_i32 : i32
    %1 = arith.extui %0 : i1 to i32
    %c0_i32_0 = arith.constant 0 : i32
    %2 = arith.cmpi ne, %1, %c0_i32_0 : i32
    scf.if %2 {
      %c0_13 = arith.constant 0 : index
      %c0_14 = arith.constant 0 : index
      %18 = vector.load %arg6[%c0_13, %c0_14] : memref<1x512xf32, #tpu.memory_space<vmem>>, vector<1x512xf32>
      %19 = vector.shape_cast %18 : vector<1x512xf32> to vector<1x512xf32>
      %20 = vector.broadcast %19 : vector<1x512xf32> to vector<16x512xf32>
      %c0_15 = arith.constant 0 : index
      %c0_16 = arith.constant 0 : index
      %21 = vector.load %arg7[%c0_15, %c0_16] : memref<16x512xf32, #tpu.memory_space<vmem>>, vector<16x512xf32>
      tpu.vector_store %arg7[%c0_15, %c0_16], %20 {strides = array<i32>} : memref<16x512xf32, #tpu.memory_space<vmem>>, vector<16x512xf32>,
    } else {
    }
    %c0 = arith.constant 0 : index
    %c0_1 = arith.constant 0 : index
    %3 = vector.load %arg2[%c0, %c0_1] : memref<16x512xbf16, #tpu.memory_space<vmem>>, vector<16x512xbf16>
    %c0_2 = arith.constant 0 : index
    %c0_3 = arith.constant 0 : index
    %4 = vector.load %arg3[%c0_2, %c0_3] : memref<512x256xbf16, #tpu.memory_space<vmem>>, vector<512x256xbf16>
    %cst = arith.constant dense<0.000000e+00> : vector<16x256xf32>
    %5 = tpu.matmul %3, %4, %cst {dimension_numbers = #tpu.dot_dimension_numbers<[1], [0], [0], [1], [0, 0, 1, 1], [], []>} : vector<16x512xbf16>, vector<512x256xbf16>, vector<16x256xf32> -> vector<16x256xf32>
    %6 = arith.index_cast %arg1 : i32 to index
    %c0_4 = arith.constant 0 : index
    %7 = vector.load %arg4[%6, %c0_4] : memref<8x256xf32, #tpu.memory_space<vmem>>, vector<1x256xf32>
    %8 = vector.broadcast %7 : vector<1x256xf32> to vector<16x256xf32>
    %9 = arith.addf %5, %8 : vector<16x256xf32>
    %cst_5 = arith.constant 0.000000e+00 : f32
    %10 = vector.broadcast %cst_5 : f32 to vector<16x256xf32>
    %11 = arith.maximumf %9, %10 : vector<16x256xf32>
    %c0_6 = arith.constant 0 : index
    %c0_7 = arith.constant 0 : index
    %12 = vector.load %arg7[%c0_6, %c0_7] : memref<16x512xf32, #tpu.memory_space<vmem>>, vector<16x512xf32>
    %13 = arith.truncf %11 : vector<16x256xf32> to vector<16x256xbf16>
    %c0_8 = arith.constant 0 : index
    %c0_9 = arith.constant 0 : index
    %14 = vector.load %arg5[%c0_8, %c0_9] : memref<256x512xbf16, #tpu.memory_space<vmem>>, vector<256x512xbf16>
    %cst_10 = arith.constant dense<0.000000e+00> : vector<16x512xf32>
    %15 = tpu.matmul %13, %14, %cst_10 {dimension_numbers = #tpu.dot_dimension_numbers<[1], [0], [0], [1], [0, 0, 1, 1], [], []>} : vector<16x256xbf16>, vector<256x512xbf16>, vector<16x512xf32> -> vector<16x512xf32>
    %16 = arith.addf %12, %15 : vector<16x512xf32>
    %c0_11 = arith.constant 0 : index
    %c0_12 = arith.constant 0 : index
    %17 = vector.load %arg7[%c0_11, %c0_12] : memref<16x512xf32, #tpu.memory_space<vmem>>, vector<16x512xf32>
    tpu.vector_store %arg7[%c0_11, %c0_12], %16 {strides = array<i32>} : memref<16x512xf32, #tpu.memory_space<vmem>>, vector<16x512xf32>,
    return
  }
  func.func @transform_0(%arg0: i32, %arg1: i32) -> (i32, i32) {
    %c0_i32 = arith.constant 0 : i32
    %c0_i32_0 = arith.constant 0 : i32
    return %arg0, %c0_i32 : i32, i32
  }
  func.func @transform_1(%arg0: i32, %arg1: i32) -> (i32, i32) {
    %c0_i32 = arith.constant 0 : i32
    %c0_i32_0 = arith.constant 0 : i32
    return %c0_i32, %arg1 : i32, i32
  }
  func.func @transform_2(%arg0: i32, %arg1: i32) -> (i32, i32) {
    %c0_i32 = arith.constant 0 : i32
    %c0_i32_0 = arith.constant 0 : i32
    %c0_i32_1 = arith.constant 0 : i32
    return %c0_i32, %c0_i32_0 : i32, i32
  }
  func.func @transform_3(%arg0: i32, %arg1: i32) -> (i32, i32) {
    %c0_i32 = arith.constant 0 : i32
    %c0_i32_0 = arith.constant 0 : i32
    return %arg1, %c0_i32 : i32, i32
  }
  func.func @transform_4(%arg0: i32, %arg1: i32) -> (i32, i32) {
    %c0_i32 = arith.constant 0 : i32
    %c0_i32_0 = arith.constant 0 : i32
    %c0_i32_1 = arith.constant 0 : i32
    return %c0_i32, %c0_i32_0 : i32, i32
  }
  func.func @transform_5(%arg0: i32, %arg1: i32) -> (i32, i32) {
    %c0_i32 = arith.constant 0 : i32
    %c0_i32_0 = arith.constant 0 : i32
    return %arg0, %c0_i32 : i32, i32
  }
}

</mosaic_0001>

<bundles_post_ra>
// kernel: tpu_custom_call.1
= control target key start
LH: loop header
LB: loop body
LE: loop exit
PB: predicated region body
PF: predicated region fallthrough
CT: control target
= control target key end

     0   :  { %s3095_s0 = inlined_call_operand.hbm [shape: bf16[16,512], index: 0, kind: input, shape index: {}]   ;;  %s3096_s1 = inlined_call_operand.hbm [shape: bf16[512,2048], index: 1, kind: input, shape index: {}]   ;;  %s3097_s2 = inlined_call_operand.hbm [shape: f32[8,256], index: 2, kind: input, shape index: {}]   ;;  %s3098_s3 = inlined_call_operand.hbm [shape: bf16[2048,512], index: 3, kind: input, shape index: {}]   ;;  %s3099_s4 = inlined_call_operand.hbm [shape: f32[1,512], index: 4, kind: input, shape index: {}]   ;;  %s3100_s5 = inlined_call_operand.hbm [shape: f32[16,512], index: 5, kind: output, shape index: {}]  }
   0x1   :  { %3103 = sst [smem:[#allocation18_spill]] %s3095_s0 }
   0x2   :  { %3104 = sst [smem:[#allocation19_spill]] %s3096_s1 }
   0x3   :  { %3105 = sst [smem:[#allocation20_spill]] %s3097_s2 }
   0x4   :  { %3106 = sst [smem:[#allocation21_spill]] %s3099_s4 }
   0x5   :  { %10 = vsyncpa [#allocation3], 0 }
   0x6   :  { %11 = vsyncpa [#allocation6], 0 }
   0x7   :  { %13 = vsyncpa [#allocation6 + $0x1], 0 }
   0x8   :  { %14 = vsyncpa [#allocation9], 0 }
   0x9   :  { %16 = vsyncpa [#allocation9 + $0x1], 0 }
   0xa   :  { %17 = vsyncpa [#allocation4], 0  ;;  %s2653_s18 = smov 0   ;;  %s2655_s19 = smov 0  }
   0xb   :  { %s2657_s20 = smov 0   ;;  %s2659_s21 = smov 0  }
   0xc   :  { %s2661_s22 = smov 0   ;;  %s2663_s23 = smov 0  }
   0xd LB: > { %s2682_s24 = sadd.s32 4294967295, %s2610_s23   ;;  %s68_s25 = sadd.s32 1, %s2598_s20  ;;  %s2610_s23 = sphi %s2663_s23, %s23_s23   ;;  %s2606_s22 = sphi %s2661_s22, %s3122_s22   ;;  %s2602_s21 = sphi %s2659_s21, %s3121_s21   ;;  %s2598_s20 = sphi %s2657_s20, %s3120_s20   ;;  %s2594_s19 = sphi %s2655_s19, %s3119_s19   ;;  %s2590_s18 = sphi %s2653_s18, %s3118_s18  }
   0xe   : > { %p75_p0 = scmp.ne.s32.totalorder %s2598_s20, %s2594_s19  ;;  %p76_p1 = scmp.eq.s32.totalorder %s2610_s23, 0 }
   0xf   : > { %p81_p2 = scmp.ne.s32.totalorder %s2594_s19, %s2590_s18  ;;  %p82_p3 = scmp.eq.s32.totalorder %s2682_s24, 0 }
  0x10   : > { %p2690_p4 = por %p76_p1, %p75_p0  ;;  %p1568_p5 = scmp.ge.s32.totalorder %s2610_s23, 1 }
  0x11   : > { %p2697_p6 = por %p82_p3, %p81_p2  ;;  %p186_p7 = scmp.lt.s32.totalorder %s2610_s23, 9 }
  0x12   : > { %s3109_s2 = sld [smem:[#allocation20_spill]]  ;;  %s2612_s7 = smov [#allocation7]  }
  0x13   : > { %p2705_p8 = pnand %p1568_p5, %p186_p7  ;;  %s218_s8 = sshll.u32 %s2612_s7, 4  ;;  %s219_s8 = int_to_ptr.vmem [resolvable:$true] %s218_s8 }
  0x14   : > { %p2297_p10 = scmp.lt.s32.totalorder %s2610_s23, 8  ;;  %s3112_s4 = sld [smem:[#allocation21_spill]] }
  0x15   : > { %p2277_p9 = pneg %p2705_p8  ;;  %s2613_s14 = smov [#allocation10]  }
  0x16   : > { %p2723_p12 = pnand %p2297_p10, %p2690_p4  ;;  %s230_s15 = sshll.u32 %s2613_s14, 4  ;;  %s231_s15 = int_to_ptr.vmem [resolvable:$true] %s230_s15 }
  0x17   : > { %p2714_p11 = pnand %p2277_p9, %p82_p3  ;;  %s3114_s0 = sld [smem:[#allocation18_spill]] }
  0x18   : > { %s216_s30 = sshll.u32 %s3109_s2, 4  ;;  %s2614_s26 = smov [#allocation2]   ;;  %s217_s30 = int_to_ptr.hbm [resolvable:$true] %s216_s30 }
  0x19   : > { %2283 = dma.hbm_to_vmem [thread:$0]  (!%p2714_p11), %s217_s30, 256, %s219_s8, [#allocation6]  }
  0x1a   : > { %s228_s12 = sshll.u32 %s3112_s4, 4  ;;  %s203_s28 = sshll.u32 %s2614_s26, 4  ;;  %s229_s12 = int_to_ptr.hbm [resolvable:$true] %s228_s12  ;;  %s204_s28 = int_to_ptr.vmem [resolvable:$true] %s203_s28 }
  0x1b   : > { %2286 = dma.hbm_to_vmem [thread:$0]  (!%p2714_p11), %s229_s12, 64, %s231_s15, [#allocation9]  }
  0x1c   : > { %s3101_s29 = smov 256   ;;  %s3102_s7 = smov 16  }
  0x1d   : > { %s201_s18 = sshll.u32 %s3114_s0, 4  ;;  %s241_s30 = sand.u32 1, %s2610_s23   ;;  %s202_s18 = int_to_ptr.hbm [resolvable:$true] %s201_s18 }
  0x1e   : > { %2280 = dma.hbm_to_vmem [thread:$0]  (!%p2714_p11), %s202_s18, 512, %s204_s28, [#allocation3], %s3101_s29, %s3101_s29, %s3102_s7  }
  0x1f   : > { %s32_s8 = sadd.s32 1, %s2606_s22  ;;  %s243_s10 = sand.u32 1, %s2598_s20  }
  0x20   : > { %p33_p13 = scmp.ge.s32.totalorder %s32_s8, 8  ;;  %s1573_s11 = sshll.u32 %s243_s10, 9 }
  0x21   : > { %s2121_s12 = sshll.u32 %s2606_s22, 3  ;;  %s3115_s1 = sld [smem:[#allocation19_spill]] }
  0x22   : > { %s3124_s8 = smov (%p33_p13, %s32_s8), 0  ;;  %s245_s16 = scalar_lea.vmem [#allocation5], %s1573_s11 }
  0x23   : > { %s253_s17 = sshll.u32 %s245_s16, 4  ;;  %s65_s18 = ssub.s32 %s2606_s22, %s3124_s8  ;;  %s254_s17 = int_to_ptr.vmem [resolvable:$true] %s253_s17 }
  0x24   : > { %p66_p0 = scmp.eq.s32.totalorder %s65_s18, 0  ;;  %s242_s10 = scalar_lea.sflag [#allocation6], %s241_s30 }
  0x25   : > { %s2617_s29 = smov 1024   ;;  %s2618_s7 = smov 128  }
  0x26   : > { %s2753_s28 = scalar_select %p66_p0, %s2598_s20, %s68_s25  }
  0x27   : > { %s250_s9 = scalar_lea.hbm %s3115_s1, %s2121_s12  ;;  %s2619_s0 = smov 8  }
  0x28   : > { %s251_s26 = sshll.u32 %s250_s9, 4  ;;  %s2123_s14 = sshll.u32 %s2606_s22, 9  ;;  %s252_s26 = int_to_ptr.hbm [resolvable:$true] %s251_s26 }
  0x29   : > { %2290 = dma.hbm_to_vmem [thread:$0]  (!%p2723_p12), %s252_s26, 8192, %s254_s17, %s242_s10, %s2617_s29, %s2618_s7, %s2619_s0  }
  0x2a   : > { %s267_s15 = scalar_lea.vmem [#allocation8], %s1573_s11  ;;  %s273_s9 = scalar_lea.hbm %s3098_s3, %s2123_s14 }
  0x2b   : > { %s276_s12 = sshll.u32 %s267_s15, 4  ;;  %s274_s18 = sshll.u32 %s273_s9, 4  ;;  %s277_s12 = int_to_ptr.vmem [resolvable:$true] %s276_s12  ;;  %s275_s18 = int_to_ptr.hbm [resolvable:$true] %s274_s18 }
  0x2c   : > { %s264_s2 = scalar_lea.sflag [#allocation9], %s241_s30  ;;  %s3116_s25 = smov 16  }
  0x2d   : > { %s3117_s4 = smov 256   ;;  %288 = sbr.rel (%p2705_p8) target bundleno = 459 (0x1cb), region = 40 }
  0x2e   : > { %2293 = dma.hbm_to_vmem [thread:$0]  (!%p2723_p12), %s275_s18, 8192, %s277_s12, %s264_s2, %s3117_s4, %s3117_s4, %s3116_s25  }
  0x32   : > { %2565 = dma.done.wait (%p82_p3), [#allocation3], 512  }
  0x33   : > { %2567 = vsyncadd (%p82_p3), [#allocation3], 4294966784  ;;  %s295_s0 = sand.u32 1, %s2682_s24   ;;  %s297_s1 = sand.u32 1, %s2594_s19  }
  0x34   : > { %s1582_s29 = sshll.u32 %s297_s1, 9  ;;  %s296_s13 = scalar_lea.sflag [#allocation6], %s295_s0 }
  0x35   : > { %s2774_s7 = scalar_lea.vmem [#allocation5], %s1582_s29 }
  0x36   : > { %2569 = dma.done.wait (%p2697_p6), %s296_s13, 8192  }
  0x37   : > { %2571 = vsyncadd (%p2697_p6), %s296_s13, 4294959104 }
  0x38   : > { %2573 = dma.done.wait (%p82_p3), [#allocation6], 256  }
  0x39   : > { %2575 = vsyncadd (%p82_p3), [#allocation6], 4294967040  ;;  %s311_s2 = scalar_lea.sflag [#allocation9], %s295_s0  ;;  %s2784_s4 = scalar_lea.vmem [#allocation8], %s1582_s29 }
  0x3a   : > { %2577 = dma.done.wait (%p2697_p6), %s311_s2, 8192  }
  0x3b   : > { %2579 = vsyncadd (%p2697_p6), %s311_s2, 4294959104 }
  0x3c   : > { %2581 = dma.done.wait (%p82_p3), [#allocation9], 64  }
  0x3d   : > { %2583 = vsyncadd (%p82_p3), [#allocation9], 4294967232  ;;  %p1586_p1 = scmp.ne.s32.totalorder %s2602_s21, 0 }
  0x3f   : > { %354 = sbr.rel (%p1586_p1) target bundleno = 79 (0x4f), region = 64 }
  0x44   : > { %v355_v0 = vld [vmem:[#allocation10] sm:$0xf] }
  0x45   : > { %v357_v1 = vperm.slane %v355_v0, 0  ;;  %v358_v2 = vperm.slane %v355_v0, 1  ;;  %v359_v3 = vperm.slane %v355_v0, 2  ;;  %v360_v4 = vperm.slane %v355_v0, 3 }
  0x47   : > { %365 = vst [vmem:[#allocation11] sm:$0xff] %v357_v1 }
  0x48   : > { %369 = vst [vmem:[#allocation11 + $0x20] sm:$0xff] %v357_v1 }
  0x49   : > { %366 = vst [vmem:[#allocation11 + $0x8] sm:$0xff] %v358_v2 }
  0x4a   : > { %370 = vst [vmem:[#allocation11 + $0x28] sm:$0xff] %v358_v2 }
  0x4b   : > { %367 = vst [vmem:[#allocation11 + $0x10] sm:$0xff] %v359_v3 }
  0x4c   : > { %371 = vst [vmem:[#allocation11 + $0x30] sm:$0xff] %v359_v3 }
  0x4d   : > { %368 = vst [vmem:[#allocation11 + $0x18] sm:$0xff] %v360_v4 }
  0x4e   : > { %372 = vst [vmem:[#allocation11 + $0x38] sm:$0xff] %v360_v4 }
  0x4f PF: > { %v1663_v5 = vld [vmem:[%s2774_s7 + $0x70] sm:$0xf]  ;;  %v2143_v6 = vld [vmem:[%s2774_s7 + $0x74] sm:$0xf0]  ;;  %v1655_v16 = vld [vmem:[%s2774_s7 + $0x60] sm:$0xf] }
  0x50   : > { %v1727_v7 = vld [vmem:[%s2774_s7 + $0xf0] sm:$0xf]  ;;  %v1664_v8 = vor.u32 %v2143_v6, %v1663_v5  ;;  %v2159_v9 = vld [vmem:[%s2774_s7 + $0xf4] sm:$0xf0]  ;;  %v2141_v18 = vld [vmem:[%s2774_s7 + $0x64] sm:$0xf0] }
  0x51   : > { %v1791_v10 = vld [vmem:[%s2774_s7 + $0x170] sm:$0xf]  ;;  %v2175_v11 = vld [vmem:[%s2774_s7 + $0x174] sm:$0xf0]  ;;  %v1728_v12 = vor.u32 %v2159_v9, %v1727_v7  ;;  %v1719_v19 = vld [vmem:[%s2774_s7 + $0xe0] sm:$0xf]  ;;  %v1656_v21 = vor.u32 %v2141_v18, %v1655_v16 }
  0x52   : > { %v1792_v13 = vor.u32 %v2175_v11, %v1791_v10  ;;  %v1855_v14 = vld [vmem:[%s2774_s7 + $0x1f0] sm:$0xf]  ;;  %v2191_v15 = vld [vmem:[%s2774_s7 + $0x1f4] sm:$0xf0]  ;;  %795 = vmatpush.bf16.msra.mxu0 %v1664_v8  ;;  %v2157_v20 = vld [vmem:[%s2774_s7 + $0xe4] sm:$0xf0] }
  0x53   : > { %v1856_v17 = vor.u32 %v2191_v15, %v1855_v14  ;;  %809 = vmatpush.bf16.msra.mxu1 %v1728_v12  ;;  %v1720_v22 = vor.u32 %v2157_v20, %v1719_v19  ;;  %v1783_v23 = vld [vmem:[%s2774_s7 + $0x160] sm:$0xf]  ;;  %v2173_v24 = vld [vmem:[%s2774_s7 + $0x164] sm:$0xf0]  ;;  %v1647_v28 = vld [vmem:[%s2774_s7 + $0x50] sm:$0xf] }
  0x54   : > { %823 = vmatpush.bf16.msra.mxu2 %v1792_v13  ;;  %v1847_v25 = vld [vmem:[%s2774_s7 + $0x1e0] sm:$0xf]  ;;  %v1784_v26 = vor.u32 %v2173_v24, %v1783_v23  ;;  %v2189_v27 = vld [vmem:[%s2774_s7 + $0x1e4] sm:$0xf0]  ;;  %v2139_v29 = vld [vmem:[%s2774_s7 + $0x54] sm:$0xf0] }
  0x55   : > { %837 = vmatpush.bf16.msra.mxu3 %v1856_v17  ;;  %v1848_v30 = vor.u32 %v2189_v27, %v1847_v25  ;;  %v1711_v31 = vld [vmem:[%s2774_s7 + $0xd0] sm:$0xf]  ;;  %v2155_v32 = vld [vmem:[%s2774_s7 + $0xd4] sm:$0xf0]  ;;  %v1648_v34 = vor.u32 %v2139_v29, %v1647_v28  ;;  %v1639_v40 = vld [vmem:[%s2774_s7 + $0x40] sm:$0xf] }
  0x56   : > { %v1775_v33 = vld [vmem:[%s2774_s7 + $0x150] sm:$0xf]  ;;  %796 = vmatpush.bf16.msra.mxu0 %v1656_v21  ;;  %v2171_v35 = vld [vmem:[%s2774_s7 + $0x154] sm:$0xf0]  ;;  %v1712_v38 = vor.u32 %v2155_v32, %v1711_v31  ;;  %v2137_v41 = vld [vmem:[%s2774_s7 + $0x44] sm:$0xf0] }
  0x57   : > { %v1839_v36 = vld [vmem:[%s2774_s7 + $0x1d0] sm:$0xf]  ;;  %v2187_v37 = vld [vmem:[%s2774_s7 + $0x1d4] sm:$0xf0]  ;;  %810 = vmatpush.bf16.msra.mxu1 %v1720_v22  ;;  %v1776_v39 = vor.u32 %v2171_v35, %v1775_v33  ;;  %v1703_v42 = vld [vmem:[%s2774_s7 + $0xc0] sm:$0xf]  ;;  %v1640_v49 = vor.u32 %v2137_v41, %v1639_v40 }
  0x58   : > { %824 = vmatpush.bf16.msra.mxu2 %v1784_v26  ;;  %v1840_v43 = vor.u32 %v2187_v37, %v1839_v36  ;;  %v2153_v44 = vld [vmem:[%s2774_s7 + $0xc4] sm:$0xf0]  ;;  %v1767_v45 = vld [vmem:[%s2774_s7 + $0x140] sm:$0xf]  ;;  %v1631_v52 = vld [vmem:[%s2774_s7 + $0x30] sm:$0xf] }
  0x59   : > { %838 = vmatpush.bf16.msra.mxu3 %v1848_v30  ;;  %v2169_v46 = vld [vmem:[%s2774_s7 + $0x144] sm:$0xf0]  ;;  %v1831_v47 = vld [vmem:[%s2774_s7 + $0x1c0] sm:$0xf]  ;;  %v1704_v50 = vor.u32 %v2153_v44, %v1703_v42  ;;  %v2135_v53 = vld [vmem:[%s2774_s7 + $0x34] sm:$0xf0] }
  0x5a   : > { %v2185_v48 = vld [vmem:[%s2774_s7 + $0x1c4] sm:$0xf0]  ;;  %797 = vmatpush.bf16.msra.mxu0 %v1648_v34  ;;  %v1768_v51 = vor.u32 %v2169_v46, %v1767_v45  ;;  %v1695_v54 = vld [vmem:[%s2774_s7 + $0xb0] sm:$0xf]  ;;  %v2151_v56 = vld [vmem:[%s2774_s7 + $0xb4] sm:$0xf0]  ;;  %v1632_v61 = vor.u32 %v2135_v53, %v1631_v52 }
  0x5b   : > { %811 = vmatpush.bf16.msra.mxu1 %v1712_v38  ;;  %v1832_v55 = vor.u32 %v2185_v48, %v1831_v47  ;;  %v1759_v57 = vld [vmem:[%s2774_s7 + $0x130] sm:$0xf]  ;;  %v2167_v58 = vld [vmem:[%s2774_s7 + $0x134] sm:$0xf0]  ;;  %v1696_v62 = vor.u32 %v2151_v56, %v1695_v54  ;;  %v1623_v0 = vld [vmem:[%s2774_s7 + $0x20] sm:$0xf] }
  0x5c   : > { %825 = vmatpush.bf16.msra.mxu2 %v1776_v39  ;;  %v1823_v59 = vld [vmem:[%s2774_s7 + $0x1b0] sm:$0xf]  ;;  %v2183_v60 = vld [vmem:[%s2774_s7 + $0x1b4] sm:$0xf0]  ;;  %v1760_v63 = vor.u32 %v2167_v58, %v1759_v57  ;;  %v2133_v1 = vld [vmem:[%s2774_s7 + $0x24] sm:$0xf0] }
  0x5d   : > { %839 = vmatpush.bf16.msra.mxu3 %v1840_v43  ;;  %v1687_v2 = vld [vmem:[%s2774_s7 + $0xa0] sm:$0xf]  ;;  %v1824_v3 = vor.u32 %v2183_v60, %v1823_v59  ;;  %v2149_v4 = vld [vmem:[%s2774_s7 + $0xa4] sm:$0xf0]  ;;  %v1624_v9 = vor.u32 %v2133_v1, %v1623_v0  ;;  %v1615_v10 = vld [vmem:[%s2774_s7 + $0x10] sm:$0xf] }
  0x5e   : > { %798 = vmatpush.bf16.msra.mxu0 %v1640_v49  ;;  %v1751_v5 = vld [vmem:[%s2774_s7 + $0x120] sm:$0xf]  ;;  %v2165_v6 = vld [vmem:[%s2774_s7 + $0x124] sm:$0xf0]  ;;  %v1688_v11 = vor.u32 %v2149_v4, %v1687_v2  ;;  %v2131_v13 = vld [vmem:[%s2774_s7 + $0x14] sm:$0xf0] }
  0x5f   : > { %812 = vmatpush.bf16.msra.mxu1 %v1704_v50  ;;  %v1815_v7 = vld [vmem:[%s2774_s7 + $0x1a0] sm:$0xf]  ;;  %v2181_v8 = vld [vmem:[%s2774_s7 + $0x1a4] sm:$0xf0]  ;;  %v1752_v12 = vor.u32 %v2165_v6, %v1751_v5  ;;  %v1679_v14 = vld [vmem:[%s2774_s7 + $0x90] sm:$0xf]  ;;  %v1616_v23 = vor.u32 %v2131_v13, %v1615_v10 }
  0x60   : > { %826 = vmatpush.bf16.msra.mxu2 %v1768_v51  ;;  %v2147_v15 = vld [vmem:[%s2774_s7 + $0x94] sm:$0xf0]  ;;  %v1816_v16 = vor.u32 %v2181_v8, %v1815_v7  ;;  %v1743_v17 = vld [vmem:[%s2774_s7 + $0x110] sm:$0xf]  ;;  %v1607_v21 = vld [vmem:[%s2774_s7] sm:$0xf] }
  0x61   : > { %840 = vmatpush.bf16.msra.mxu3 %v1832_v55  ;;  %v2163_v18 = vld [vmem:[%s2774_s7 + $0x114] sm:$0xf0]  ;;  %v1807_v19 = vld [vmem:[%s2774_s7 + $0x190] sm:$0xf]  ;;  %v2129_v22 = vld [vmem:[%s2774_s7 + $0x4] sm:$0xf0]  ;;  %v1680_v28 = vor.u32 %v2147_v15, %v1679_v14 }
  0x62   : > { %799 = vmatpush.bf16.msra.mxu0 %v1632_v61  ;;  %v2179_v20 = vld [vmem:[%s2774_s7 + $0x194] sm:$0xf0]  ;;  %v1671_v24 = vld [vmem:[%s2774_s7 + $0x80] sm:$0xf]  ;;  %v2145_v25 = vld [vmem:[%s2774_s7 + $0x84] sm:$0xf0]  ;;  %v1744_v29 = vor.u32 %v2163_v18, %v1743_v17  ;;  %v1608_v40 = vor.u32 %v2129_v22, %v1607_v21 }
  0x63   : > { %813 = vmatpush.bf16.msra.mxu1 %v1696_v62  ;;  %v1735_v26 = vld [vmem:[%s2774_s7 + $0x100] sm:$0xf]  ;;  %v2161_v27 = vld [vmem:[%s2774_s7 + $0x104] sm:$0xf0]  ;;  %v2142_v32 = vld [vmem:[%s2774_s7 + $0x74] sm:$0xf]  ;;  %v1808_v33 = vor.u32 %v2179_v20, %v1807_v19  ;;  %v1672_v44 = vor.u32 %v2145_v25, %v1671_v24 }
  0x64   : > { %827 = vmatpush.bf16.msra.mxu2 %v1760_v63  ;;  %v1799_v30 = vld [vmem:[%s2774_s7 + $0x180] sm:$0xf]  ;;  %v2177_v31 = vld [vmem:[%s2774_s7 + $0x184] sm:$0xf0]  ;;  %v1665_v34 = vld [vmem:[%s2774_s7 + $0x78] sm:$0xf0]  ;;  %v1736_v45 = vor.u32 %v2161_v27, %v1735_v26 }
  0x65   : > { %841 = vmatpush.bf16.msra.mxu3 %v1824_v3  ;;  %v2158_v35 = vld [vmem:[%s2774_s7 + $0xf4] sm:$0xf]  ;;  %v1729_v36 = vld [vmem:[%s2774_s7 + $0xf8] sm:$0xf0]  ;;  %v1599_v42 = vld [vmem:[#allocation2 + $0x8] sm:$0xf]  ;;  %v1800_v49 = vor.u32 %v2177_v31, %v1799_v30  ;;  %v1668_v50 = vor.u32 %v2142_v32, %v1665_v34 }
  0x66   : > { %800 = vmatpush.bf16.msra.mxu0 %v1624_v9  ;;  %v2174_v37 = vld [vmem:[%s2774_s7 + $0x174] sm:$0xf]  ;;  %v1793_v38 = vld [vmem:[%s2774_s7 + $0x178] sm:$0xf0]  ;;  %v2127_v43 = vld [vmem:[#allocation2 + $0x14] sm:$0xf0]  ;;  %v1732_v54 = vor.u32 %v2158_v35, %v1729_v36 }
  0x67   : > { %814 = vmatpush.bf16.msra.mxu1 %v1688_v11  ;;  %v2190_v39 = vld [vmem:[%s2774_s7 + $0x1f4] sm:$0xf]  ;;  %v1857_v41 = vld [vmem:[%s2774_s7 + $0x1f8] sm:$0xf0]  ;;  %v1591_v46 = vld [vmem:[#allocation2] sm:$0xf]  ;;  %v1796_v55 = vor.u32 %v2174_v37, %v1793_v38  ;;  %v2870_v60 = vor.u32 %v2127_v43, %v1599_v42 }
  0x68   : > { %828 = vmatpush.bf16.msra.mxu2 %v1752_v12  ;;  %v2126_v47 = vld [vmem:[#allocation2 + $0xc] sm:$0xf0]  ;;  %v2125_v48 = vld [vmem:[#allocation2 + $0xc] sm:$0xf]  ;;  %v1601_v51 = vld [vmem:[#allocation2 + $0x18] sm:$0xf0]  ;;  %v1860_v59 = vor.u32 %v2190_v39, %v1857_v41 }
  0x69   : > { %842 = vmatpush.bf16.msra.mxu3 %v1816_v16  ;;  %v2140_v52 = vld [vmem:[%s2774_s7 + $0x64] sm:$0xf]  ;;  %v1657_v53 = vld [vmem:[%s2774_s7 + $0x68] sm:$0xf0]  ;;  %v1593_v58 = vld [vmem:[#allocation2 + $0x10] sm:$0xf0]  ;;  %v2875_v0 = vor.u32 %v2126_v47, %v1591_v46  ;;  %v2877_v1 = vor.u32 %v2125_v48, %v1601_v51 }
  0x6a   : > { %801 = vmatpush.bf16.msra.mxu0 %v1616_v23  ;;  %v2156_v56 = vld [vmem:[%s2774_s7 + $0xe4] sm:$0xf]  ;;  %v1721_v61 = vld [vmem:[%s2774_s7 + $0xe8] sm:$0xf0]  ;;  %v1660_v4 = vor.u32 %v2140_v52, %v1657_v53  ;;  %v2138_v8 = vld [vmem:[%s2774_s7 + $0x54] sm:$0xf] }
  0x6b   : > { %815 = vmatpush.bf16.msra.mxu1 %v1680_v28  ;;  %v2124_v57 = vld [vmem:[#allocation2 + $0x4] sm:$0xf]  ;;  %v1785_v63 = vld [vmem:[%s2774_s7 + $0x168] sm:$0xf0]  ;;  %v1724_v6 = vor.u32 %v2156_v56, %v1721_v61  ;;  %v1649_v9 = vld [vmem:[%s2774_s7 + $0x58] sm:$0xf0] }
  0x6c   : > { %829 = vmatpush.bf16.msra.mxu2 %v1744_v29  ;;  %v2172_v62 = vld [vmem:[%s2774_s7 + $0x164] sm:$0xf]  ;;  %v1849_v3 = vld [vmem:[%s2774_s7 + $0x1e8] sm:$0xf0]  ;;  %v2881_v5 = vor.u32 %v2124_v57, %v1593_v58  ;;  %v2154_v10 = vld [vmem:[%s2774_s7 + $0xd4] sm:$0xf]  ;;  %v1652_v17 = vor.u32 %v2138_v8, %v1649_v9 }
  0x6d   : > { %843 = vmatpush.bf16.msra.mxu3 %v1808_v33  ;;  %v2188_v2 = vld [vmem:[%s2774_s7 + $0x1e4] sm:$0xf]  ;;  %v1788_v7 = vor.u32 %v2172_v62, %v1785_v63  ;;  %v1713_v12 = vld [vmem:[%s2774_s7 + $0xd8] sm:$0xf0]  ;;  %v2170_v13 = vld [vmem:[%s2774_s7 + $0x154] sm:$0xf] }
  0x6e   : > { %802 = vmatpush.bf16.msra.mxu0 %v1608_v40  ;;  %v1852_v11 = vor.u32 %v2188_v2, %v1849_v3  ;;  %v1777_v14 = vld [vmem:[%s2774_s7 + $0x158] sm:$0xf0]  ;;  %v2186_v15 = vld [vmem:[%s2774_s7 + $0x1d4] sm:$0xf]  ;;  %v1716_v18 = vor.u32 %v2154_v10, %v1713_v12  ;;  %v2136_v20 = vld [vmem:[%s2774_s7 + $0x44] sm:$0xf] }
  0x6f   : > { %816 = vmatpush.bf16.msra.mxu1 %v1672_v44  ;;  %v1841_v16 = vld [vmem:[%s2774_s7 + $0x1d8] sm:$0xf0]  ;;  %v1780_v19 = vor.u32 %v2170_v13, %v1777_v14  ;;  %v1641_v21 = vld [vmem:[%s2774_s7 + $0x48] sm:$0xf0]  ;;  %v2152_v22 = vld [vmem:[%s2774_s7 + $0xc4] sm:$0xf] }
  0x70   : > { %830 = vmatpush.bf16.msra.mxu2 %v1736_v45  ;;  %v1844_v23 = vor.u32 %v2186_v15, %v1841_v16  ;;  %v1705_v24 = vld [vmem:[%s2774_s7 + $0xc8] sm:$0xf0]  ;;  %v2168_v25 = vld [vmem:[%s2774_s7 + $0x144] sm:$0xf]  ;;  %v1644_v29 = vor.u32 %v2136_v20, %v1641_v21  ;;  %v2134_v32 = vld [vmem:[%s2774_s7 + $0x34] sm:$0xf] }
  0x71   : > { %844 = vmatpush.bf16.msra.mxu3 %v1800_v49  ;;  %803 = vmatmul.bf16.vlgmr.msra.gmra.mxu0 %v2875_v0  ;;  %v1769_v26 = vld [vmem:[%s2774_s7 + $0x148] sm:$0xf0]  ;;  %v2184_v27 = vld [vmem:[%s2774_s7 + $0x1c4] sm:$0xf]  ;;  %v1708_v30 = vor.u32 %v2152_v22, %v1705_v24  ;;  %v1633_v33 = vld [vmem:[%s2774_s7 + $0x38] sm:$0xf0] }
  0x72   : > { %851 = vmatpush.bf16.msrb.mxu0 %v1668_v50  ;;  %817 = vmatmul.bf16.vlgmr.msra.gmra.mxu1 %v2881_v5  ;;  %v1833_v28 = vld [vmem:[%s2774_s7 + $0x1c8] sm:$0xf0]  ;;  %v1772_v31 = vor.u32 %v2168_v25, %v1769_v26  ;;  %v2150_v34 = vld [vmem:[%s2774_s7 + $0xb4] sm:$0xf]  ;;  %v1697_v36 = vld [vmem:[%s2774_s7 + $0xb8] sm:$0xf0]  ;;  %v1636_v41 = vor.u32 %v2134_v32, %v1633_v33 }
  0x73   : > { %865 = vmatpush.bf16.msrb.mxu1 %v1732_v54  ;;  %831 = vmatmul.bf16.vlgmr.msra.gmra.mxu2 %v2870_v60  ;;  %v1836_v35 = vor.u32 %v2184_v27, %v1833_v28  ;;  %v2166_v37 = vld [vmem:[%s2774_s7 + $0x134] sm:$0xf]  ;;  %v1761_v38 = vld [vmem:[%s2774_s7 + $0x138] sm:$0xf0]  ;;  %v1700_v42 = vor.u32 %v2150_v34, %v1697_v36  ;;  %v2132_v44 = vld [vmem:[%s2774_s7 + $0x24] sm:$0xf] }
  0x74   : > { %879 = vmatpush.bf16.msrb.mxu2 %v1796_v55  ;;  %845 = vmatmul.bf16.vlgmr.msra.gmra.mxu3 %v2877_v1  ;;  %v2182_v39 = vld [vmem:[%s2774_s7 + $0x1b4] sm:$0xf]  ;;  %v1825_v40 = vld [vmem:[%s2774_s7 + $0x1b8] sm:$0xf0]  ;;  %v1764_v43 = vor.u32 %v2166_v37, %v1761_v38  ;;  %v1625_v45 = vld [vmem:[%s2774_s7 + $0x28] sm:$0xf0] }
  0x75   : > { %893 = vmatpush.bf16.msrb.mxu3 %v1860_v59  ;;  %v2148_v46 = vld [vmem:[%s2774_s7 + $0xa4] sm:$0xf]  ;;  %v1828_v47 = vor.u32 %v2182_v39, %v1825_v40  ;;  %v1689_v48 = vld [vmem:[%s2774_s7 + $0xa8] sm:$0xf0]  ;;  %v1628_v53 = vor.u32 %v2132_v44, %v1625_v45  ;;  %v2130_v56 = vld [vmem:[%s2774_s7 + $0x14] sm:$0xf] }
  0x76   : > { %852 = vmatpush.bf16.msrb.mxu0 %v1660_v4  ;;  %v2164_v49 = vld [vmem:[%s2774_s7 + $0x124] sm:$0xf]  ;;  %v1753_v50 = vld [vmem:[%s2774_s7 + $0x128] sm:$0xf0]  ;;  %v1692_v54 = vor.u32 %v2148_v46, %v1689_v48  ;;  %v1617_v57 = vld [vmem:[%s2774_s7 + $0x18] sm:$0xf0] }
  0x77   : > { %866 = vmatpush.bf16.msrb.mxu1 %v1724_v6  ;;  %v2180_v51 = vld [vmem:[%s2774_s7 + $0x1a4] sm:$0xf]  ;;  %v1817_v52 = vld [vmem:[%s2774_s7 + $0x1a8] sm:$0xf0]  ;;  %v1756_v55 = vor.u32 %v2164_v49, %v1753_v50  ;;  %v2146_v58 = vld [vmem:[%s2774_s7 + $0x94] sm:$0xf]  ;;  %v1620_v4 = vor.u32 %v2130_v56, %v1617_v57 }
  0x78   : > { %880 = vmatpush.bf16.msrb.mxu2 %v1788_v7  ;;  %v1820_v59 = vor.u32 %v2180_v51, %v1817_v52  ;;  %v1681_v61 = vld [vmem:[%s2774_s7 + $0x98] sm:$0xf0]  ;;  %v2162_v62 = vld [vmem:[%s2774_s7 + $0x114] sm:$0xf]  ;;  %v2128_v6 = vld [vmem:[%s2774_s7 + $0x4] sm:$0xf] }
  0x79   : > { %894 = vmatpush.bf16.msrb.mxu3 %v1852_v11  ;;  %v1745_v63 = vld [vmem:[%s2774_s7 + $0x118] sm:$0xf0]  ;;  %v2178_v2 = vld [vmem:[%s2774_s7 + $0x194] sm:$0xf]  ;;  %v1609_v7 = vld [vmem:[%s2774_s7 + $0x8] sm:$0xf0]  ;;  %v1684_v8 = vor.u32 %v2146_v58, %v1681_v61 }
  0x7a   : > { %853 = vmatpush.bf16.msrb.mxu0 %v1652_v17  ;;  %v1809_v3 = vld [vmem:[%s2774_s7 + $0x198] sm:$0xf0]  ;;  %v1748_v9 = vor.u32 %v2162_v62, %v1745_v63  ;;  %v2144_v10 = vld [vmem:[%s2774_s7 + $0x84] sm:$0xf]  ;;  %v1673_v11 = vld [vmem:[%s2774_s7 + $0x88] sm:$0xf0] }
  0x7b   : > { %867 = vmatpush.bf16.msrb.mxu1 %v1716_v18  ;;  %v1812_v12 = vor.u32 %v2178_v2, %v1809_v3  ;;  %v2160_v13 = vld [vmem:[%s2774_s7 + $0x104] sm:$0xf]  ;;  %v1737_v14 = vld [vmem:[%s2774_s7 + $0x108] sm:$0xf0]  ;;  %v1975_v17 = vld [vmem:[%s2784_s4 + $0xe0] sm:$0xf]  ;;  %v1676_v22 = vor.u32 %v2144_v10, %v1673_v11 }
  0x7c   : > { %881 = vmatpush.bf16.msrb.mxu2 %v1780_v19  ;;  %v2176_v15 = vld [vmem:[%s2774_s7 + $0x184] sm:$0xf]  ;;  %v1801_v16 = vld [vmem:[%s2774_s7 + $0x188] sm:$0xf0]  ;;  %v2223_v18 = vld [vmem:[%s2784_s4 + $0xec] sm:$0xf0]  ;;  %v1612_v19 = vor.u32 %v2128_v6, %v1609_v7 }
  0x7d   : > { %895 = vmatpush.bf16.msrb.mxu3 %v1844_v23  ;;  %v2221_v20 = vld [vmem:[%s2784_s4 + $0xe4] sm:$0xf]  ;;  %v1977_v21 = vld [vmem:[%s2784_s4 + $0xf0] sm:$0xf0]  ;;  %v1740_v23 = vor.u32 %v2160_v13, %v1737_v14  ;;  %v1804_v24 = vor.u32 %v2176_v15, %v1801_v16  ;;  %v1976_v25 = vor.u32 %v2223_v18, %v1975_v17  ;;  %v1959_v27 = vld [vmem:[%s2784_s4 + $0xc0] sm:$0xf] }
  0x7e   : > { %854 = vmatpush.bf16.msrb.mxu0 %v1644_v29  ;;  %v1980_v26 = vor.u32 %v2221_v20, %v1977_v21  ;;  %v2219_v28 = vld [vmem:[%s2784_s4 + $0xcc] sm:$0xf0]  ;;  %v2217_v29 = vld [vmem:[%s2784_s4 + $0xc4] sm:$0xf]  ;;  %v1943_v33 = vld [vmem:[%s2784_s4 + $0xa0] sm:$0xf] }
  0x7f   : > { %868 = vmatpush.bf16.msrb.mxu1 %v1708_v30  ;;  %v1961_v30 = vld [vmem:[%s2784_s4 + $0xd0] sm:$0xf0]  ;;  %v2215_v34 = vld [vmem:[%s2784_s4 + $0xac] sm:$0xf0]  ;;  %v1927_v38 = vld [vmem:[%s2784_s4 + $0x80] sm:$0xf] }
  0x80   : > { %882 = vmatpush.bf16.msrb.mxu2 %v1772_v31  ;;  %v1960_v31 = vor.u32 %v2219_v28, %v1959_v27  ;;  %v1964_v32 = vor.u32 %v2217_v29, %v1961_v30  ;;  %v1945_v36 = vld [vmem:[%s2784_s4 + $0xb0] sm:$0xf0]  ;;  %v2211_v39 = vld [vmem:[%s2784_s4 + $0x8c] sm:$0xf0]  ;;  %v2209_v40 = vld [vmem:[%s2784_s4 + $0x84] sm:$0xf] }
  0x81   : > { %896 = vmatpush.bf16.msrb.mxu3 %v1836_v35  ;;  %v2213_v35 = vld [vmem:[%s2784_s4 + $0xa4] sm:$0xf]  ;;  %v1913_v44 = vld [vmem:[%s2784_s4 + $0x70] sm:$0xf0]  ;;  %v2203_v48 = vld [vmem:[%s2784_s4 + $0x4c] sm:$0xf0] }
  0x82   : > { %855 = vmatpush.bf16.msrb.mxu0 %v1636_v41  ;;  %v1948_v37 = vor.u32 %v2213_v35, %v1945_v36  ;;  %v2201_v49 = vld [vmem:[%s2784_s4 + $0x44] sm:$0xf]  ;;  %v1897_v50 = vld [vmem:[%s2784_s4 + $0x50] sm:$0xf0]  ;;  %v2195_v61 = vld [vmem:[%s2784_s4 + $0xc] sm:$0xf0] }
  0x83   : > { %869 = vmatpush.bf16.msrb.mxu1 %v1700_v42  ;;  %v1911_v42 = vld [vmem:[%s2784_s4 + $0x60] sm:$0xf]  ;;  %v1900_v52 = vor.u32 %v2201_v49, %v1897_v50  ;;  %v1881_v57 = vld [vmem:[%s2784_s4 + $0x30] sm:$0xf0]  ;;  %v2193_v62 = vld [vmem:[%s2784_s4 + $0x4] sm:$0xf] }
  0x84   : > { %883 = vmatpush.bf16.msrb.mxu2 %v1764_v43  ;;  %v2207_v43 = vld [vmem:[%s2784_s4 + $0x6c] sm:$0xf0]  ;;  %v1865_v2 = vld [vmem:[%s2784_s4 + $0x10] sm:$0xf0]  ;;  %v2103_v3 = vld [vmem:[%s2784_s4 + $0x1e0] sm:$0xf] }
  0x85   : > { %897 = vmatpush.bf16.msrb.mxu3 %v1828_v47  ;;  %v1912_v45 = vor.u32 %v2207_v43, %v1911_v42  ;;  %v1895_v47 = vld [vmem:[%s2784_s4 + $0x40] sm:$0xf]  ;;  %v1868_v6 = vor.u32 %v2193_v62, %v1865_v2  ;;  %v1983_v10 = vld [vmem:[%s2784_s4 + $0xe8] sm:$0xf]  ;;  %v2222_v13 = vld [vmem:[%s2784_s4 + $0xec] sm:$0xf] }
  0x86   : > { %856 = vmatpush.bf16.msrb.mxu0 %v1628_v53  ;;  %v1896_v51 = vor.u32 %v2203_v48, %v1895_v47  ;;  %v1879_v53 = vld [vmem:[%s2784_s4 + $0x20] sm:$0xf]  ;;  %v1985_v14 = vld [vmem:[%s2784_s4 + $0xf8] sm:$0xf0]  ;;  %s441_s27 = sshra.s32 %s2602_s21, 3  ;;  %s444_s6 = sand.u32 7, %s2602_s21 }
  0x87   : > { %870 = vmatpush.bf16.msrb.mxu1 %v1692_v54  ;;  %v2199_v54 = vld [vmem:[%s2784_s4 + $0x2c] sm:$0xf0]  ;;  %v1988_v16 = vor.u32 %v2222_v13, %v1985_v14  ;;  %v2087_v17 = vld [vmem:[%s2784_s4 + $0x1c0] sm:$0xf]  ;;  %v2089_v21 = vld [vmem:[%s2784_s4 + $0x1d0] sm:$0xf0] }
  0x88   : > { %884 = vmatpush.bf16.msrb.mxu2 %v1756_v55  ;;  %v2197_v55 = vld [vmem:[%s2784_s4 + $0x24] sm:$0xf]  ;;  %v1880_v56 = vor.u32 %v2199_v54, %v1879_v53  ;;  %v2251_v18 = vld [vmem:[%s2784_s4 + $0x1cc] sm:$0xf0]  ;;  %v1969_v27 = vld [vmem:[%s2784_s4 + $0xd8] sm:$0xf0] }
  0x89   : > { %898 = vmatpush.bf16.msrb.mxu3 %v1820_v59  ;;  %v1884_v58 = vor.u32 %v2197_v55, %v1881_v57  ;;  %v1863_v59 = vld [vmem:[%s2784_s4] sm:$0xf]  ;;  %v2088_v20 = vor.u32 %v2251_v18, %v2087_v17  ;;  %s2192_s30 = sshll.u32 %s441_s27, 4  ;;  %v2247_v30 = vld [vmem:[%s2784_s4 + $0x1ac] sm:$0xf0]  ;;  %s2620_s17 = smov [#allocation11]  }
  0x8a   : > { %857 = vmatpush.bf16.msrb.mxu0 %v1620_v4  ;;  %v1864_v63 = vor.u32 %v2195_v61, %v1863_v59  ;;  %v2255_v4 = vld [vmem:[%s2784_s4 + $0x1ec] sm:$0xf0]  ;;  %v2071_v29 = vld [vmem:[%s2784_s4 + $0x1a0] sm:$0xf]  ;;  %v2216_v35 = vld [vmem:[%s2784_s4 + $0xb4] sm:$0xf0]  ;;  %s447_s21 = sadd.s32 %s2192_s30, %s444_s6 }
  0x8b   : > { %871 = vmatpush.bf16.msrb.mxu1 %v1684_v8  ;;  %v2104_v7 = vor.u32 %v2255_v4, %v2103_v3  ;;  %v2253_v8 = vld [vmem:[%s2784_s4 + $0x1e4] sm:$0xf]  ;;  %v2057_v42 = vld [vmem:[%s2784_s4 + $0x190] sm:$0xf0]  ;;  %v1935_v43 = vld [vmem:[%s2784_s4 + $0x88] sm:$0xf] }
  0x8c   : > { %885 = vmatpush.bf16.msrb.mxu2 %v1748_v9  ;;  %v2105_v9 = vld [vmem:[%s2784_s4 + $0x1f0] sm:$0xf0]  ;;  %v1937_v47 = vld [vmem:[%s2784_s4 + $0x98] sm:$0xf0]  ;;  %v2039_v49 = vld [vmem:[%s2784_s4 + $0x160] sm:$0xf] }
  0x8d   : > { %899 = vmatpush.bf16.msrb.mxu3 %v1812_v12  ;;  %v2108_v11 = vor.u32 %v2253_v8, %v2105_v9  ;;  %v2224_v12 = vld [vmem:[%s2784_s4 + $0xf4] sm:$0xf0]  ;;  %v2239_v50 = vld [vmem:[%s2784_s4 + $0x16c] sm:$0xf0]  ;;  %v2041_v53 = vld [vmem:[%s2784_s4 + $0x170] sm:$0xf0] }
  0x8e   : > { %858 = vmatpush.bf16.msrb.mxu0 %v1612_v19  ;;  %v1984_v15 = vor.u32 %v2224_v12, %v1983_v10  ;;  %v2249_v19 = vld [vmem:[%s2784_s4 + $0x1c4] sm:$0xf]  ;;  %v1919_v54 = vld [vmem:[%s2784_s4 + $0x68] sm:$0xf]  ;;  %v2208_v55 = vld [vmem:[%s2784_s4 + $0x74] sm:$0xf0] }
  0x8f   : > { %872 = vmatpush.bf16.msrb.mxu1 %v1676_v22  ;;  %v1967_v22 = vld [vmem:[%s2784_s4 + $0xc8] sm:$0xf]  ;;  %s448_s11 = scalar_lea.vmem [#allocation7], %s447_s21  ;;  %v2206_v59 = vld [vmem:[%s2784_s4 + $0x6c] sm:$0xf]  ;;  %s1442_s26 = sshll.u32 %s2620_s17, 4  ;;  %s1443_s26 = int_to_ptr.vmem [resolvable:$true] %s1442_s26 }
  0x90   : > { %886 = vmatpush.bf16.msrb.mxu2 %v1740_v23  ;;  %v2220_v23 = vld [vmem:[%s2784_s4 + $0xd4] sm:$0xf0]  ;;  %v1921_v61 = vld [vmem:[%s2784_s4 + $0x78] sm:$0xf0]  ;;  %v2023_v62 = vld [vmem:[%s2784_s4 + $0x140] sm:$0xf] }
  0x91   : > { %900 = vmatpush.bf16.msrb.mxu3 %v1804_v24  ;;  %859 = vmatmul.bf16.vlgmr.msrb.gmra.mxu0 %v2875_v0  ;;  %v1944_v0 = vor.u32 %v2215_v34, %v1943_v33  ;;  %v2092_v24 = vor.u32 %v2249_v19, %v2089_v21  ;;  %v2073_v33 = vld [vmem:[%s2784_s4 + $0x1b0] sm:$0xf0]  ;;  %v1951_v34 = vld [vmem:[%s2784_s4 + $0xa8] sm:$0xf]  ;;  %v2235_v2 = vld [vmem:[%s2784_s4 + $0x14c] sm:$0xf0] }
  0x92   : > { %1305 = vmatpush.bf16.msra.mxu0 %v1976_v25  ;;  %873 = vmatmul.bf16.vlgmr.msrb.gmra.mxu1 %v2881_v5  ;;  %v1929_v5 = vld [vmem:[%s2784_s4 + $0x90] sm:$0xf0]  ;;  %v1968_v25 = vor.u32 %v2220_v23, %v1967_v22  ;;  %v2233_v3 = vld [vmem:[%s2784_s4 + $0x144] sm:$0xf]  ;;  %v1903_v8 = vld [vmem:[%s2784_s4 + $0x48] sm:$0xf] }
  0x93   : > { %887 = vmatmul.bf16.vlgmr.msrb.gmra.mxu2 %v2870_v60  ;;  %v1928_v60 = vor.u32 %v2211_v39, %v1927_v38  ;;  %v1932_v41 = vor.u32 %v2209_v40, %v1929_v5  ;;  %1319 = vmatpush.bf16.msra.mxu1 %v2104_v7  ;;  %v1953_v38 = vld [vmem:[%s2784_s4 + $0xb8] sm:$0xf0]  ;;  %v2055_v40 = vld [vmem:[%s2784_s4 + $0x180] sm:$0xf]  ;;  %v2243_v5 = vld [vmem:[%s2784_s4 + $0x18c] sm:$0xf0] }
  0x94   : > { %1333 = vmatpush.bf16.msra.mxu2 %v1980_v26  ;;  %901 = vmatmul.bf16.vlgmr.msrb.gmra.mxu3 %v2877_v1  ;;  %v2205_v1 = vld [vmem:[%s2784_s4 + $0x64] sm:$0xf]  ;;  %v2218_v26 = vld [vmem:[%s2784_s4 + $0xcc] sm:$0xf]  ;;  %v2025_v4 = vld [vmem:[%s2784_s4 + $0x150] sm:$0xf0] }
  0x95   : > { %v1916_v46 = vor.u32 %v2205_v1, %v1913_v44  ;;  %1347 = vmatpush.bf16.msra.mxu3 %v2108_v11  ;;  %v1972_v28 = vor.u32 %v2218_v26, %v1969_v27  ;;  %v2212_v1 = vld [vmem:[%s2784_s4 + $0x94] sm:$0xf0]  ;;  %v2028_v7 = vor.u32 %v2233_v3, %v2025_v4  ;;  %v2202_v10 = vld [vmem:[%s2784_s4 + $0x4c] sm:$0xf]  ;;  %v1905_v12 = vld [vmem:[%s2784_s4 + $0x58] sm:$0xf0] }
  0x96   : > { %1306 = vmatpush.bf16.msra.mxu0 %v1960_v31  ;;  %v2245_v31 = vld [vmem:[%s2784_s4 + $0x1a4] sm:$0xf]  ;;  %v2204_v9 = vld [vmem:[%s2784_s4 + $0x54] sm:$0xf0]  ;;  %v1908_v13 = vor.u32 %v2202_v10, %v1905_v12  ;;  %v2009_v19 = vld [vmem:[%s2784_s4 + $0x130] sm:$0xf0] }
  0x97   : > { %1320 = vmatpush.bf16.msra.mxu1 %v2088_v20  ;;  %v2076_v36 = vor.u32 %v2245_v31, %v2073_v33  ;;  %v1904_v11 = vor.u32 %v2204_v9, %v1903_v8  ;;  %v2229_v17 = vld [vmem:[%s2784_s4 + $0x124] sm:$0xf]  ;;  %v1887_v20 = vld [vmem:[%s2784_s4 + $0x28] sm:$0xf]  ;;  %v2200_v21 = vld [vmem:[%s2784_s4 + $0x34] sm:$0xf0] }
  0x98   : > { %1334 = vmatpush.bf16.msra.mxu2 %v1964_v32  ;;  %v2072_v32 = vor.u32 %v2247_v30, %v2071_v29  ;;  %v2012_v23 = vor.u32 %v2229_v17, %v2009_v19  ;;  %v1889_v26 = vld [vmem:[%s2784_s4 + $0x38] sm:$0xf0]  ;;  %v1991_v30 = vld [vmem:[%s2784_s4 + $0x100] sm:$0xf]  ;;  %v2227_v31 = vld [vmem:[%s2784_s4 + $0x10c] sm:$0xf0] }
  0x99   : > { %1348 = vmatpush.bf16.msra.mxu3 %v2092_v24  ;;  %v1888_v24 = vor.u32 %v2200_v21, %v1887_v20  ;;  %v1992_v33 = vor.u32 %v2227_v31, %v1991_v30  ;;  %v2081_v3 = vld [vmem:[%s2784_s4 + $0x1b8] sm:$0xf0]  ;;  %v2063_v9 = vld [vmem:[%s2784_s4 + $0x188] sm:$0xf]  ;;  %v2244_v10 = vld [vmem:[%s2784_s4 + $0x194] sm:$0xf0] }
  0x9a   : > { %1307 = vmatpush.bf16.msra.mxu0 %v1944_v0  ;;  %v1952_v0 = vor.u32 %v2216_v35, %v1951_v34  ;;  %v1993_v34 = vld [vmem:[%s2784_s4 + $0x110] sm:$0xf0]  ;;  %v1871_v35 = vld [vmem:[%s2784_s4 + $0x8] sm:$0xf]  ;;  %v2240_v19 = vld [vmem:[%s2784_s4 + $0x174] sm:$0xf0] }
  0x9b   : > { %1321 = vmatpush.bf16.msra.mxu1 %v2072_v32  ;;  %v2225_v32 = vld [vmem:[%s2784_s4 + $0x104] sm:$0xf]  ;;  %v2238_v20 = vld [vmem:[%s2784_s4 + $0x16c] sm:$0xf]  ;;  %v2015_v31 = vld [vmem:[%s2784_s4 + $0x128] sm:$0xf] }
  0x9c   : > { %1335 = vmatpush.bf16.msra.mxu2 %v1948_v37  ;;  %v2214_v37 = vld [vmem:[%s2784_s4 + $0xac] sm:$0xf]  ;;  %s1444_s15 = sshll.u32 %s3100_s5, 4  ;;  %p2301_p2 = scmp.eq.s32.totalorder %s2682_s24, 7  ;;  %s1445_s15 = int_to_ptr.hbm [resolvable:$true] %s1444_s15 }
  0x9d   : > { %v1956_v39 = vor.u32 %v2214_v37, %v1953_v38  ;;  %1349 = vmatpush.bf16.msra.mxu3 %v2076_v36  ;;  %v2196_v36 = vld [vmem:[%s2784_s4 + $0x14] sm:$0xf0]  ;;  %v1996_v37 = vor.u32 %v2225_v32, %v1993_v34  ;;  %v2017_v34 = vld [vmem:[%s2784_s4 + $0x138] sm:$0xf0]  ;;  %s2621_s12 = smov 512   ;;  %s2622_s16 = smov 32  }
  0x9e   : > { %1308 = vmatpush.bf16.msra.mxu0 %v1928_v60  ;;  %v2241_v60 = vld [vmem:[%s2784_s4 + $0x184] sm:$0xf]  ;;  %v1872_v38 = vor.u32 %v2196_v36, %v1871_v35  ;;  %v2232_v32 = vld [vmem:[%s2784_s4 + $0x134] sm:$0xf0] }
  0x9f   : > { %v2060_v44 = vor.u32 %v2241_v60, %v2057_v42  ;;  %v2256_v42 = vld [vmem:[%s2784_s4 + $0x1f4] sm:$0xf0] }
  0xa0   : > { %1336 = vmatpush.bf16.msra.mxu2 %v1932_v41  ;;  %v2056_v41 = vor.u32 %v2243_v5, %v2055_v40  ;;  %v1873_v40 = vld [vmem:[%s2784_s4 + $0x18] sm:$0xf0]  ;;  %v2111_v5 = vld [vmem:[%s2784_s4 + $0x1e8] sm:$0xf] }
  0xa1   : > { %1350 = vmatpush.bf16.msra.mxu3 %v2060_v44 }
  0xa2   : > { %1309 = vmatpush.bf16.msra.mxu0 %v1912_v45  ;;  %v1936_v45 = vor.u32 %v2212_v1, %v1935_v43  ;;  %1322 = vmatpush.bf16.msra.mxu1 %v2056_v41  ;;  %v2254_v43 = vld [vmem:[%s2784_s4 + $0x1ec] sm:$0xf]  ;;  %v2113_v1 = vld [vmem:[%s2784_s4 + $0x1f8] sm:$0xf0] }
  0xa4   : > { %1337 = vmatpush.bf16.msra.mxu2 %v1916_v46  ;;  %v2210_v46 = vld [vmem:[%s2784_s4 + $0x8c] sm:$0xf] }
  0xa5   : > { %v1940_v48 = vor.u32 %v2210_v46, %v1937_v47  ;;  %v2116_v46 = vor.u32 %v2254_v43, %v2113_v1  ;;  %v2095_v47 = vld [vmem:[%s2784_s4 + $0x1c8] sm:$0xf] }
  0xa6   : > { %1310 = vmatpush.bf16.msra.mxu0 %v1896_v51  ;;  %v2237_v51 = vld [vmem:[%s2784_s4 + $0x164] sm:$0xf] }
  0xa7   : > { %v2044_v57 = vor.u32 %v2237_v51, %v2041_v53  ;;  %v2097_v53 = vld [vmem:[%s2784_s4 + $0x1d8] sm:$0xf0] }
  0xa8   : > { %1338 = vmatpush.bf16.msra.mxu2 %v1900_v52  ;;  %v2040_v52 = vor.u32 %v2239_v50, %v2039_v49  ;;  %v2250_v49 = vld [vmem:[%s2784_s4 + $0x1cc] sm:$0xf] }
  0xa9   : > { %1351 = vmatpush.bf16.msra.mxu3 %v2044_v57  ;;  %v2100_v57 = vor.u32 %v2250_v49, %v2097_v53 }
  0xaa   : > { %1311 = vmatpush.bf16.msra.mxu0 %v1880_v56  ;;  %v3011_v56 = vld [vmem:[%s448_s11] ss:$8 sm:$0x3]  ;;  %1323 = vmatpush.bf16.msra.mxu1 %v2040_v52 }
  0xab   : > { %v451_v14 = vperm.slane %v3011_v56, 0  ;;  %v452_v35 = vperm.slane %v3011_v56, 1 }
  0xac   : > { %1339 = vmatpush.bf16.msra.mxu2 %v1884_v58  ;;  %v1920_v58 = vor.u32 %v2208_v55, %v1919_v54 }
  0xad   : > { %1352 = vmatpush.bf16.msra.mxu3 %v2028_v7 }
  0xae   : > { %1312 = vmatpush.bf16.msra.mxu0 %v1864_v63  ;;  %v1924_v63 = vor.u32 %v2206_v59, %v1921_v61  ;;  %v2079_v59 = vld [vmem:[%s2784_s4 + $0x1a8] sm:$0xf]  ;;  %v2248_v61 = vld [vmem:[%s2784_s4 + $0x1b4] sm:$0xf0] }
  0xb0   : > { %1340 = vmatpush.bf16.msra.mxu2 %v1868_v6  ;;  %v2024_v6 = vor.u32 %v2235_v2, %v2023_v62  ;;  %v2246_v62 = vld [vmem:[%s2784_s4 + $0x1ac] sm:$0xf]  ;;  %v2080_v2 = vor.u32 %v2248_v61, %v2079_v59 }
  0xb1   : > { %1353 = vmatpush.bf16.msra.mxu3 %v2012_v23  ;;  %v2049_v23 = vld [vmem:[%s2784_s4 + $0x178] sm:$0xf0] }
  0xb2   : > { %1361 = vmatpush.bf16.msrb.mxu0 %v1984_v15  ;;  %1324 = vmatpush.bf16.msra.mxu1 %v2024_v6  ;;  %v2007_v15 = vld [vmem:[%s2784_s4 + $0x120] sm:$0xf]  ;;  %v2084_v6 = vor.u32 %v2246_v62, %v2081_v3  ;;  %v911_v62 = vld [vmem:[#allocation11] sm:$0xff] }
  0xb4   : > { %1389 = vmatpush.bf16.msrb.mxu2 %v1988_v16  ;;  %v2231_v16 = vld [vmem:[%s2784_s4 + $0x12c] sm:$0xf0] }
  0xb5   : > { %v2008_v18 = vor.u32 %v2231_v16, %v2007_v15  ;;  %1354 = vmatpush.bf16.msra.mxu3 %v1996_v37  ;;  %v2065_v15 = vld [vmem:[%s2784_s4 + $0x198] sm:$0xf0] }
  0xb6   : > { %1362 = vmatpush.bf16.msrb.mxu0 %v1968_v25  ;;  %v2198_v25 = vld [vmem:[%s2784_s4 + $0x2c] sm:$0xf] }
  0xb7   : > { %1325 = vmatpush.bf16.msra.mxu1 %v2008_v18  ;;  %v1892_v29 = vor.u32 %v2198_v25, %v1889_v26  ;;  %v2047_v18 = vld [vmem:[%s2784_s4 + $0x168] sm:$0xf]  ;;  %v2052_v25 = vor.u32 %v2238_v20, %v2049_v23  ;;  %v2236_v26 = vld [vmem:[%s2784_s4 + $0x154] sm:$0xf0] }
  0xb8   : > { %1390 = vmatpush.bf16.msrb.mxu2 %v1972_v28 }
  0xb9   : > { %1403 = vmatpush.bf16.msrb.mxu3 %v2116_v46 }
  0xba   : > { %1363 = vmatpush.bf16.msrb.mxu0 %v1952_v0 }
  0xbb   : > { %1326 = vmatpush.bf16.msra.mxu1 %v1992_v33  ;;  %v2230_v33 = vld [vmem:[%s2784_s4 + $0x12c] sm:$0xf] }
  0xbc   : > { %1391 = vmatpush.bf16.msrb.mxu2 %v1956_v39  ;;  %v2194_v39 = vld [vmem:[%s2784_s4 + $0xc] sm:$0xf]  ;;  %v2020_v37 = vor.u32 %v2230_v33, %v2017_v34 }
  0xbd   : > { %v1876_v41 = vor.u32 %v2194_v39, %v1873_v40  ;;  %1404 = vmatpush.bf16.msrb.mxu3 %v2100_v57  ;;  %v2228_v39 = vld [vmem:[%s2784_s4 + $0x114] sm:$0xf0]  ;;  %v2226_v40 = vld [vmem:[%s2784_s4 + $0x10c] sm:$0xf] }
  0xbe   : > { %1364 = vmatpush.bf16.msrb.mxu0 %v1936_v45  ;;  %v2112_v45 = vor.u32 %v2256_v42, %v2111_v5  ;;  %v2001_v5 = vld [vmem:[%s2784_s4 + $0x118] sm:$0xf0] }
  0xbf   : > { %v2004_v43 = vor.u32 %v2226_v40, %v2001_v5 }
  0xc0   : > { %1392 = vmatpush.bf16.msrb.mxu2 %v1940_v48  ;;  %v2252_v48 = vld [vmem:[%s2784_s4 + $0x1d4] sm:$0xf0]  ;;  %1375 = vmatpush.bf16.msrb.mxu1 %v2112_v45 }
  0xc1   : > { %v2096_v52 = vor.u32 %v2252_v48, %v2095_v47  ;;  %1405 = vmatpush.bf16.msrb.mxu3 %v2084_v6  ;;  %v912_v6 = vld [vmem:[#allocation11 + $0x8] sm:$0xff] }
  0xc2   : > { %1365 = vmatpush.bf16.msrb.mxu0 %v1920_v58 }
  0xc4   : > { %1393 = vmatpush.bf16.msrb.mxu2 %v1924_v63  ;;  %1376 = vmatpush.bf16.msrb.mxu1 %v2096_v52 }
  0xc6   : > { %1366 = vmatpush.bf16.msrb.mxu0 %v1904_v11  ;;  %v2242_v11 = vld [vmem:[%s2784_s4 + $0x18c] sm:$0xf] }
  0xc7   : > { %v2068_v16 = vor.u32 %v2242_v11, %v2065_v15 }
  0xc8   : > { %1394 = vmatpush.bf16.msrb.mxu2 %v1908_v13  ;;  %1377 = vmatpush.bf16.msrb.mxu1 %v2080_v2 }
  0xc9   : > { %1406 = vmatpush.bf16.msrb.mxu3 %v2068_v16  ;;  %v916_v16 = vld [vmem:[#allocation11 + $0x28] sm:$0xff] }
  0xca   : > { %1367 = vmatpush.bf16.msrb.mxu0 %v1888_v24  ;;  %v2031_v24 = vld [vmem:[%s2784_s4 + $0x148] sm:$0xf] }
  0xcc   : > { %1395 = vmatpush.bf16.msrb.mxu2 %v1892_v29  ;;  %v2032_v29 = vor.u32 %v2236_v26, %v2031_v24 }
  0xcd   : > { %1407 = vmatpush.bf16.msrb.mxu3 %v2052_v25  ;;  %v914_v25 = vld [vmem:[#allocation11 + $0x18] sm:$0xff] }
  0xce   : > { %1368 = vmatpush.bf16.msrb.mxu0 %v1872_v38  ;;  %v1999_v38 = vld [vmem:[%s2784_s4 + $0x108] sm:$0xf] }
  0xcf   : > { %v2000_v42 = vor.u32 %v2228_v39, %v1999_v38 }
  0xd0   : > { %1396 = vmatpush.bf16.msrb.mxu2 %v1876_v41 }
  0xee   : > { %v804_v22 = vpop.f32.mrf.mxu0 }
  0xef   : > { %v805_v27 = vadd.f32 %v804_v22, %v451_v14  ;;  %v818_v28 = vpop.f32.mrf.mxu1  ;;  %v2048_v22 = vor.u32 %v2240_v19, %v2047_v18  ;;  %v913_v19 = vld [vmem:[#allocation11 + $0x10] sm:$0xff] }
  0xf1   : > { %v819_v0 = vadd.f32 %v818_v28, %v805_v27  ;;  %v2234_v27 = vld [vmem:[%s2784_s4 + $0x14c] sm:$0xf]  ;;  %v2033_v28 = vld [vmem:[%s2784_s4 + $0x158] sm:$0xf0] }
  0xf2   : > { %v2036_v30 = vor.u32 %v2234_v27, %v2033_v28 }
  0xf4   : > { %1408 = vmatpush.bf16.msrb.mxu3 %v2036_v30 }
  0xf6   : > { %v832_v60 = vpop.f32.mrf.mxu2  ;;  %v806_v51 = vpop.f32.mrf.mxu0 }
  0xf7   : > { %v846_v44 = vpop.f32.mrf.mxu3  ;;  %v833_v50 = vadd.f32 %v832_v60, %v819_v0  ;;  %v807_v54 = vadd.f32 %v806_v51, %v451_v14  ;;  %v820_v55 = vpop.f32.mrf.mxu1  ;;  %v2064_v14 = vor.u32 %v2244_v10, %v2063_v9  ;;  %v2016_v0 = vor.u32 %v2232_v32, %v2015_v31  ;;  %v915_v9 = vld [vmem:[#allocation11 + $0x20] sm:$0xff] }
  0xf8   : > { %1409 = vmatpush.bf16.msrb.mxu3 %v2020_v37 }
  0xf9   : > { %v821_v58 = vadd.f32 %v820_v55, %v807_v54  ;;  %v847_v63 = vadd.f32 %v846_v44, %v833_v50  ;;  %1378 = vmatpush.bf16.msrb.mxu1 %v2064_v14 }
  0xfb   : > { %v907_v12 = vmax.f32 %v847_v63, 0.0 }
  0xfc   : > { %1410 = vmatpush.bf16.msrb.mxu3 %v2004_v43 }
  0xfd   : > { %1379 = vmatpush.bf16.msrb.mxu1 %v2048_v22 }
  0xfe   : > { %v834_v4 = vpop.f32.mrf.mxu2 }
  0xff   : > { %v835_v7 = vadd.f32 %v834_v4, %v821_v58  ;;  %v848_v8 = vpop.f32.mrf.mxu3 }
 0x101   : > { %v849_v13 = vadd.f32 %v848_v8, %v835_v7  ;;  %1380 = vmatpush.bf16.msrb.mxu1 %v2032_v29  ;;  %v917_v29 = vld [vmem:[#allocation11 + $0x30] sm:$0xff] }
 0x103   : > { %v909_v17 = vmax.f32 %v849_v13, 0.0 }
 0x105   : > { %v919_v21 = vpack.c.bf16 %v909_v17, %v907_v12  ;;  %1381 = vmatpush.bf16.msrb.mxu1 %v2016_v0 }
 0x107   : > { %1313 = vmatmul.bf16.vlgmr.msra.gmra.mxu0 %v919_v21  ;;  %1341 = vmatmul.bf16.vlgmr.msra.gmra.mxu2 %v919_v21 }
 0x109   : > { %1382 = vmatpush.bf16.msrb.mxu1 %v2000_v42 }
 0x10e   : > { %v860_v36 = vpop.f32.mrf.mxu0 }
 0x10f   : > { %v874_v60 = vpop.f32.mrf.mxu1  ;;  %v861_v41 = vadd.f32 %v860_v36, %v452_v35 }
 0x111   : > { %v875_v44 = vadd.f32 %v874_v60, %v861_v41 }
 0x116   : > { %v888_v1 = vpop.f32.mrf.mxu2  ;;  %v862_v46 = vpop.f32.mrf.mxu0 }
 0x117   : > { %v902_v45 = vpop.f32.mrf.mxu3  ;;  %v863_v56 = vadd.f32 %v862_v46, %v452_v35  ;;  %1369 = vmatmul.bf16.vlgmr.msrb.gmra.mxu0 %v919_v21  ;;  %1397 = vmatmul.bf16.vlgmr.msrb.gmra.mxu2 %v919_v21  ;;  %v889_v47 = vadd.f32 %v888_v1, %v875_v44  ;;  %v876_v48 = vpop.f32.mrf.mxu1  ;;  %v918_v35 = vld [vmem:[#allocation11 + $0x38] sm:$0xff] }
 0x119   : > { %v877_v49 = vadd.f32 %v876_v48, %v863_v56  ;;  %v903_v51 = vadd.f32 %v902_v45, %v889_v47 }
 0x11b   : > { %v908_v55 = vmax.f32 %v903_v51, 0.0 }
 0x11e   : > { %v890_v50 = vpop.f32.mrf.mxu2 }
 0x11f   : > { %v891_v52 = vadd.f32 %v890_v50, %v877_v49  ;;  %v904_v53 = vpop.f32.mrf.mxu3 }
 0x121   : > { %v905_v54 = vadd.f32 %v904_v53, %v891_v52 }
 0x123   : > { %v910_v57 = vmax.f32 %v905_v54, 0.0 }
 0x125   : > { %v920_v58 = vpack.c.bf16 %v910_v57, %v908_v55 }
 0x127   : > { %1327 = vmatmul.bf16.vlgmr.msra.gmra.mxu1 %v920_v58  ;;  %1355 = vmatmul.bf16.vlgmr.msra.gmra.mxu3 %v920_v58 }
 0x137   : > { %1383 = vmatmul.bf16.vlgmr.msrb.gmra.mxu1 %v920_v58  ;;  %1411 = vmatmul.bf16.vlgmr.msrb.gmra.mxu3 %v920_v58 }
 0x184   : > { %v1314_v59 = vpop.f32.mrf.mxu0 }
 0x18a   : > { %v1342_v61 = vpop.f32.mrf.mxu2 }
 0x18c   : > { %v1316_v4 = vpop.f32.mrf.mxu0 }
 0x192   : > { %v1344_v13 = vpop.f32.mrf.mxu2 }
 0x194   : > { %v1370_v15 = vpop.f32.mrf.mxu0 }
 0x19a   : > { %v1398_v24 = vpop.f32.mrf.mxu2 }
 0x19c   : > { %v1372_v28 = vpop.f32.mrf.mxu0 }
 0x1a2   : > { %v1400_v34 = vpop.f32.mrf.mxu2 }
 0x1a4   : > { %v1328_v63 = vpop.f32.mrf.mxu1 }
 0x1a5   : > { %v1329_v2 = vadd.f32 %v1328_v63, %v1314_v59 }
 0x1a7   : > { %v1417_v3 = vadd.f32 %v1329_v2, %v911_v62 }
 0x1a9   : > { %1425 = vst [vmem:[#allocation11] sm:$0xff] %v1417_v3 }
 0x1aa   : > { %v1356_v7 = vpop.f32.mrf.mxu3 }
 0x1ab   : > { %v1357_v8 = vadd.f32 %v1356_v7, %v1342_v61 }
 0x1ac   : > { %v1330_v10 = vpop.f32.mrf.mxu1 }
 0x1ad   : > { %v1418_v11 = vadd.f32 %v1357_v8, %v912_v6  ;;  %v1331_v12 = vadd.f32 %v1330_v10, %v1316_v4 }
 0x1af   : > { %1426 = vst [vmem:[#allocation11 + $0x8] sm:$0xff] %v1418_v11  ;;  %v1421_v14 = vadd.f32 %v1331_v12, %v915_v9 }
 0x1b1   : > { %1429 = vst [vmem:[#allocation11 + $0x20] sm:$0xff] %v1421_v14 }
 0x1b2   : > { %v1358_v17 = vpop.f32.mrf.mxu3 }
 0x1b3   : > { %v1359_v18 = vadd.f32 %v1358_v17, %v1344_v13 }
 0x1b4   : > { %v1384_v20 = vpop.f32.mrf.mxu1 }
 0x1b5   : > { %v1422_v21 = vadd.f32 %v1359_v18, %v916_v16  ;;  %v1385_v22 = vadd.f32 %v1384_v20, %v1370_v15 }
 0x1b7   : > { %1430 = vst [vmem:[#allocation11 + $0x28] sm:$0xff] %v1422_v21  ;;  %v1419_v23 = vadd.f32 %v1385_v22, %v913_v19 }
 0x1b9   : > { %1427 = vst [vmem:[#allocation11 + $0x10] sm:$0xff] %v1419_v23 }
 0x1ba   : > { %v1412_v26 = vpop.f32.mrf.mxu3 }
 0x1bb   : > { %v1413_v27 = vadd.f32 %v1412_v26, %v1398_v24 }
 0x1bc   : > { %v1386_v30 = vpop.f32.mrf.mxu1 }
 0x1bd   : > { %v1420_v31 = vadd.f32 %v1413_v27, %v914_v25  ;;  %v1387_v32 = vadd.f32 %v1386_v30, %v1372_v28 }
 0x1bf   : > { %1428 = vst [vmem:[#allocation11 + $0x18] sm:$0xff] %v1420_v31  ;;  %v1423_v33 = vadd.f32 %v1387_v32, %v917_v29 }
 0x1c1   : > { %1431 = vst [vmem:[#allocation11 + $0x30] sm:$0xff] %v1423_v33 }
 0x1c2   : > { %v1414_v36 = vpop.f32.mrf.mxu3 }
 0x1c3   : > { %v1415_v0 = vadd.f32 %v1414_v36, %v1400_v34 }
 0x1c5   : > { %v1424_v37 = vadd.f32 %v1415_v0, %v918_v35 }
 0x1c7   : > { %1432 = vst [vmem:[#allocation11 + $0x38] sm:$0xff] %v1424_v37 }
 0x1c8   : > { %2274 = dma.vmem_to_hbm [thread:$0]  (%p2301_p2), %s1443_s26, 1024, %s1445_s15, [#allocation4], %s2621_s12, %s2621_s12, %s2622_s16  }
 0x1c9   : > { %2585 = dma.done.wait (%p2301_p2), [#allocation4], 1024  }
 0x1ca   : > { %2587 = vsyncadd (%p2301_p2), [#allocation4], 4294966272 }
 0x1cb PF: > { %s23_s23 = sadd.s32 1, %s2610_s23   ;;  %s3118_s18 = smov %s2594_s19 }
 0x1cc   : > { %p20_p3 = scmp.ge.s32.totalorder %s23_s23, 10   ;;  %s3119_s19 = smov %s2598_s20 }
 0x1cd   : > { %s3120_s20 = smov %s2753_s28  ;;  %s3121_s21 = smov %s2606_s22 }
 0x1ce   : > { %s3122_s22 = smov %s3124_s8  ;;  %22 = sbr.rel (!%p20_p3) target bundleno = 13 (0xd), region = 110 }
 0x1d3   :  { %1461 = vsyncpa [#allocation3], 1 }
 0x1d4   :  { %1463 = vsyncpa [#allocation3 + $0x1], 1 }
 0x1d5   :  { %1464 = vsyncpa [#allocation6], 1 }
 0x1d6   :  { %1466 = vsyncpa [#allocation6 + $0x1], 1 }
 0x1d7   :  { %1467 = vsyncpa [#allocation9], 1 }
 0x1d8   :  { %1469 = vsyncpa [#allocation9 + $0x1], 1 }
 0x1d9   :  { %1470 = vsyncpa [#allocation4], 1 }
 0x1da   :  { %1472 = vsyncpa [#allocation4 + $0x1], 1 }

</bundles_post_ra>
